<compile_context>
chip_gen: v6e
topology: v6e:2x2x1
jax: 0.10.0
libtpu: 0.0.40
codegen_flags: <defaults>
</compile_context>

<pallas_src>
import functools

import jax
import jax.numpy as jnp
from jax.experimental import pallas as pl
from jax.experimental.pallas import tpu as pltpu

EPS = 1e-5


# ----------------------------------------------------------------------------
# kernel bodies
# ----------------------------------------------------------------------------
def _rowshift_conv3x3(x_flat, w_ref, H):
    """3x3 conv as 3 lane-dense matmuls + sublane row-shifts (no pad scratch).

    x_flat: (M, WC) activations, M = block_n * H (rows are n-major, h-minor).
    w_ref:  (3, WC, WC) banded weights (kw taps + width padding folded in).

    y[h] = x[h-1] @ W0 + x[h] @ W1 + x[h+1] @ W2, with out-of-image rows
    zeroed.  The shifts are pltpu.roll along the sublane axis (XLU slot) and
    the image-boundary rows are zeroed with an iota%H mask, so rows leaking
    across image boundaries inside the tile never contribute.
    """
    M, WC = x_flat.shape
    a0 = jnp.dot(x_flat, w_ref[0], preferred_element_type=jnp.float32)
    a1 = jnp.dot(x_flat, w_ref[1], preferred_element_type=jnp.float32)
    a2 = jnp.dot(x_flat, w_ref[2], preferred_element_type=jnp.float32)

    row = jax.lax.broadcasted_iota(jnp.int32, (M, WC), 0)
    not_first = (row % H) != 0          # output rows with a valid h-1 neighbour
    not_last = (row % H) != (H - 1)     # output rows with a valid h+1 neighbour

    down = pltpu.roll(a0, shift=1, axis=0)        # row r <- a0[r-1]
    up = pltpu.roll(a2, shift=M - 1, axis=0)      # row r <- a2[r+1]
    return a1 + jnp.where(not_first, down, 0.0) + jnp.where(not_last, up, 0.0)


def _conv1_kernel(x_ref, w1_ref, y1_ref, s_ref, ss_ref):
    nb, H, WC = x_ref.shape
    acc = _rowshift_conv3x3(x_ref[...].reshape(nb * H, WC), w1_ref, H)
    y1_ref[...] = acc.reshape(nb, H, WC).astype(y1_ref.dtype)
    # fused per-lane partial reductions for the BN1 batch statistics
    s_ref[...] = jnp.sum(acc, axis=0, keepdims=True).reshape(1, 1, WC)
    ss_ref[...] = jnp.sum(acc * acc, axis=0, keepdims=True).reshape(1, 1, WC)


def _bn1_conv2_kernel(y1_ref, sc1_ref, sh1_ref, w2_ref,
                      y2_ref, s_ref, ss_ref):
    nb, H, WC = y1_ref.shape
    # fused BN1 apply (y*scale + shift) + ReLU, f32 on the VPU
    h = jnp.maximum(
        y1_ref[...].astype(jnp.float32) * sc1_ref[...] + sh1_ref[...], 0.0)
    acc = _rowshift_conv3x3(
        h.reshape(nb * H, WC).astype(w2_ref.dtype), w2_ref, H)
    y2_ref[...] = acc.reshape(nb, H, WC).astype(y2_ref.dtype)
    s_ref[...] = jnp.sum(acc, axis=0, keepdims=True).reshape(1, 1, WC)
    ss_ref[...] = jnp.sum(acc * acc, axis=0, keepdims=True).reshape(1, 1, WC)


def _bn2_add_relu_kernel(y2_ref, x_ref, sc2_ref, sh2_ref, out_ref):
    y2 = y2_ref[...].astype(jnp.float32)
    resid = x_ref[...].astype(jnp.float32)              # identity shortcut
    out_ref[...] = jnp.maximum(
        y2 * sc2_ref[...] + sh2_ref[...] + resid, 0.0).astype(out_ref.dtype)


# ----------------------------------------------------------------------------
# host-side packing / glue
# ----------------------------------------------------------------------------
def _banded_weights(w_oihw, W):
    """(Cout, Cin, 3, 3) -> (3, W*Cin, W*Cout) banded matrices.

    Band block (w_in, w_out) of matrix kh is tap[kh, kw] when
    w_in == w_out + kw - 1; out-of-range blocks are absent, implementing the
    conv's width zero-padding for free (no masks / rolls along width).
    """
    w = jnp.transpose(w_oihw, (2, 3, 1, 0)).astype(jnp.float32)  # (kh,kw,Ci,Co)
    mats = []
    for kh in range(3):
        m = sum(jnp.kron(jnp.eye(W, k=1 - kw, dtype=jnp.float32), w[kh, kw])
                for kw in range(3))
        mats.append(m)
    return jnp.stack(mats)                                       # (3, WC, WC)


def _bn_scale_shift(s_part, ss_part, gamma, beta, count, W, C):
    """Finish BN batch stats and fold gamma/beta into (1, W*C) scale/shift."""
    s = jnp.sum(s_part, axis=(0, 1)).reshape(W, C).sum(axis=0)    # (C,)
    ss = jnp.sum(ss_part, axis=(0, 1)).reshape(W, C).sum(axis=0)  # (C,)
    mean = s / count
    # Single-pass sum/sum-sq reduction in f32; clamp guards the
    # E[y^2] - mean^2 cancellation (fine for normalized ResNet activations).
    var = jnp.maximum(ss / count - mean * mean, 0.0)
    scale_c = gamma.astype(jnp.float32) * jax.lax.rsqrt(var + EPS)
    shift_c = beta.astype(jnp.float32) - mean * scale_c
    scale = jnp.tile(scale_c, W).reshape(1, W * C)   # lane l = w*C + c -> c
    shift = jnp.tile(shift_c, W).reshape(1, W * C)
    return scale, shift


def _auto_block_n(N, H, WC, itemsize, *,
                  min_rows=256, min_bytes=1 << 20, max_bytes=4 << 20):
    """Pick block_n: M = block_n*H >= ~256 rows and ~1-4 MiB activation tile,
    while keeping n_tiles >= 2 (v7x dual-TC sharding + pipeline overlap)."""
    best = 1
    for bn in range(1, N + 1):
        if N % bn:
            continue
        if N >= 2 and N // bn < 2:
            continue
        if bn * H * WC * itemsize > max_bytes:
            break
        best = bn
        if bn * H >= min_rows and bn * H * WC * itemsize >= min_bytes:
            break
    return best


def _basic_block_folded(x_fold, w1, g1, b1, w2, g2, b2, *, width,
                        compute_dtype=jnp.bfloat16, block_n=None,
                        out_dtype=None):
    """BasicBlock forward on folded (N, H, W*C) activations; returns folded."""
    N, H, WC = x_fold.shape
    W = width
    C = WC // W
    assert W * C == WC
    assert w1.shape == (C, C, 3, 3) and w2.shape == (C, C, 3, 3), \
        "identity-shortcut configuration requires stride=1 and in_planes == planes"
    if out_dtype is None:
        out_dtype = compute_dtype

    itemsize = jnp.dtype(compute_dtype).itemsize
    if block_n is None:
        block_n = _auto_block_n(N, H, WC, itemsize)
    assert N % block_n == 0
    n_tiles = N // block_n

    x_c = x_fold.astype(compute_dtype)
    w1_b = _banded_weights(w1, W).astype(compute_dtype)   # (3, WC, WC)
    w2_b = _banded_weights(w2, W).astype(compute_dtype)

    img_spec = pl.BlockSpec((block_n, H, WC), lambda n: (n, 0, 0))
    wgt_spec = pl.BlockSpec((3, WC, WC), lambda n: (0, 0, 0))   # VMEM-resident
    vec_spec = pl.BlockSpec((1, WC), lambda n: (0, 0))          # VMEM-resident
    stat_spec = pl.BlockSpec((1, 1, WC), lambda n: (n, 0, 0))

    # explicit VMEM budget for the double-buffered tiles (worst pass has three
    # activation tiles in flight + one weight band), clamped to [32, 64] MiB.
    tile_b = block_n * H * WC * itemsize
    band_b = 3 * WC * WC * itemsize
    est = 2 * (3 * tile_b + band_b) + (2 << 20)
    cparams = pltpu.CompilerParams(
        dimension_semantics=("parallel",),
        vmem_limit_bytes=int(min(max(est, 32 << 20), 64 << 20)))

    stat_shape = jax.ShapeDtypeStruct((n_tiles, 1, WC), jnp.float32)
    act_shape = jax.ShapeDtypeStruct((N, H, WC), compute_dtype)
    count = N * H * W

    # ---- pass 1: conv1 + BN1 partial statistics ------------------------------
    y1, s1, ss1 = pl.pallas_call(
        _conv1_kernel,
        grid=(n_tiles,),
        in_specs=[img_spec, wgt_spec],
        out_specs=[img_spec, stat_spec, stat_spec],
        out_shape=[act_shape, stat_shape, stat_shape],
        compiler_params=cparams,
    )(x_c, w1_b)
    sc1, sh1 = _bn_scale_shift(s1, ss1, g1, b1, count, W, C)

    # ---- pass 2: BN1+ReLU, conv2 + BN2 partial statistics --------------------
    y2, s2, ss2 = pl.pallas_call(
        _bn1_conv2_kernel,
        grid=(n_tiles,),
        in_specs=[img_spec, vec_spec, vec_spec, wgt_spec],
        out_specs=[img_spec, stat_spec, stat_spec],
        out_shape=[act_shape, stat_shape, stat_shape],
        compiler_params=cparams,
    )(y1, sc1, sh1, w2_b)
    sc2, sh2 = _bn_scale_shift(s2, ss2, g2, b2, count, W, C)

    # ---- pass 3: BN2 apply + identity shortcut + ReLU ------------------------
    out = pl.pallas_call(
        _bn2_add_relu_kernel,
        grid=(n_tiles,),
        in_specs=[img_spec, img_spec, vec_spec, vec_spec],
        out_specs=img_spec,
        out_shape=jax.ShapeDtypeStruct((N, H, WC), out_dtype),
        compiler_params=cparams,
    )(y2, x_c, sc2, sh2)
    return out


# Folded-layout entry point for chaining blocks without NCHW round-trips.
basic_block_pallas_folded = jax.jit(
    _basic_block_folded,
    static_argnames=("width", "compute_dtype", "block_n", "out_dtype"))


@functools.partial(jax.jit, static_argnames=("compute_dtype", "block_n"))
def basic_block_pallas(x_nchw, w1, g1, b1, w2, g2, b2, *,
                       compute_dtype=jnp.bfloat16, block_n=None):
    """BasicBlock forward. x_nchw: (N, C, H, W) f32; conv weights (C, C, 3, 3)."""
    N, C, H, W = x_nchw.shape
    # NCHW -> lane-dense folded layout (N, H, W*C)
    x_fold = jnp.transpose(x_nchw, (0, 2, 3, 1)).reshape(N, H, W * C)
    out = _basic_block_folded(x_fold, w1, g1, b1, w2, g2, b2, width=W,
                              compute_dtype=compute_dtype, block_n=block_n,
                              out_dtype=jnp.float32)
    return jnp.transpose(out.reshape(N, H, W, C), (0, 3, 1, 2))   # back to NCHW


# ----------------------------------------------------------------------------
# plain-JAX reference (mirrors the PyTorch forward, NCHW, training-mode BN)
# ----------------------------------------------------------------------------
def basic_block_reference(x, w1, g1, b1, w2, g2, b2):
    def conv(x, w):
        return jax.lax.conv_general_dilated(
            x, w, window_strides=(1, 1), padding=((1, 1), (1, 1)),
            dimension_numbers=('NCHW', 'OIHW', 'NCHW'))

    def bn(y, g, b):
        mean = jnp.mean(y, axis=(0, 2, 3), keepdims=True)
        var = jnp.mean((y - mean) ** 2, axis=(0, 2, 3), keepdims=True)
        return ((y - mean) * jax.lax.rsqrt(var + EPS)
                * g.reshape(1, -1, 1, 1) + b.reshape(1, -1, 1, 1))

    out = jax.nn.relu(bn(conv(x, w1), g1, b1))
    out = bn(conv(out, w2), g2, b2)
    return jax.nn.relu(out + x)


if __name__ == "__main__":
    # in_planes = planes = 8, stride = 1, H = W = 16  ->  W*C = 128 lanes
    N, C, H, W = 2, 8, 16, 16
    key = jax.random.PRNGKey(0)
    kx, k1, k2, kg1, kb1, kg2, kb2 = jax.random.split(key, 7)

    x = jax.random.normal(kx, (N, C, H, W), jnp.float32)
    fan_in = C * 3 * 3
    w1 = jax.random.normal(k1, (C, C, 3, 3), jnp.float32) * (2.0 / fan_in) ** 0.5
    w2 = jax.random.normal(k2, (C, C, 3, 3), jnp.float32) * (2.0 / fan_in) ** 0.5
    g1 = 1.0 + 0.1 * jax.random.normal(kg1, (C,), jnp.float32)
    b1 = 0.1 * jax.random.normal(kb1, (C,), jnp.float32)
    g2 = 1.0 + 0.1 * jax.random.normal(kg2, (C,), jnp.float32)
    b2 = 0.1 * jax.random.normal(kb2, (C,), jnp.float32)

    ref = jax.block_until_ready(basic_block_reference(x, w1, g1, b1, w2, g2, b2))

    # bf16 compute path (performance default: bf16 MXU operands, f32 accum/BN).
    out_bf16 = jax.block_until_ready(basic_block_pallas(x, w1, g1, b1, w2, g2, b2))
    assert out_bf16.shape == (N, C, H, W)
    err_bf16 = float(jnp.max(jnp.abs(out_bf16 - ref)))
    assert err_bf16 < 5e-2, f"bf16 path max abs err = {err_bf16}"

    # f32 path: should match the PyTorch-style reference tightly.
    out_f32 = jax.block_until_ready(
        basic_block_pallas(x, w1, g1, b1, w2, g2, b2,
                           compute_dtype=jnp.float32))
    err_f32 = float(jnp.max(jnp.abs(out_f32 - ref)))
    assert err_f32 < 1e-4, f"f32 path max abs err = {err_f32}"

    print("KERNEL_OK")
</pallas_src>

<mosaic_0001>
module attributes {stable_mosaic.version = 11 : i64} {
  func.func @_conv1_kernel(%arg0: i32, %arg1: memref<1x16x128xbf16, #tpu.memory_space<vmem>>, %arg2: memref<3x128x128xbf16, #tpu.memory_space<vmem>>, %arg3: memref<1x16x128xbf16, #tpu.memory_space<vmem>>, %arg4: memref<1x1x128xf32, #tpu.memory_space<vmem>>, %arg5: memref<1x1x128xf32, #tpu.memory_space<vmem>>) attributes {dimension_semantics = [#tpu.dimension_semantics<parallel>], iteration_bounds = array<i64: 2>, scalar_prefetch = 0 : i64, scratch_operands = 0 : i64, tpu.core_type = #tpu.core_type<tc>, window_params = [{transform_indices = @transform_0, window_bounds = array<i64: 1, 16, 128>}, {pipeline_mode = #tpu.pipeline_mode<synchronous>, transform_indices = @transform_1, window_bounds = array<i64: 3, 128, 128>}, {transform_indices = @transform_2, window_bounds = array<i64: 1, 16, 128>}, {transform_indices = @transform_3, window_bounds = array<i64: 1, 1, 128>}, {transform_indices = @transform_4, window_bounds = array<i64: 1, 1, 128>}]} {
    %c0 = arith.constant 0 : index
    %c0_0 = arith.constant 0 : index
    %c0_1 = arith.constant 0 : index
    %0 = vector.load %arg1[%c0, %c0_0, %c0_1] : memref<1x16x128xbf16, #tpu.memory_space<vmem>>, vector<1x16x128xbf16>
    %1 = vector.shape_cast %0 : vector<1x16x128xbf16> to vector<16x128xbf16>
    %c0_2 = arith.constant 0 : index
    %c0_3 = arith.constant 0 : index
    %c0_4 = arith.constant 0 : index
    %2 = vector.load %arg2[%c0_2, %c0_3, %c0_4] : memref<3x128x128xbf16, #tpu.memory_space<vmem>>, vector<1x128x128xbf16>
    %3 = vector.shape_cast %2 : vector<1x128x128xbf16> to vector<128x128xbf16>
    %cst = arith.constant dense<0.000000e+00> : vector<16x128xf32>
    %4 = tpu.matmul %1, %3, %cst {dimension_numbers = #tpu.dot_dimension_numbers<[1], [0], [0], [1], [0, 0, 1, 1], [], []>} : vector<16x128xbf16>, vector<128x128xbf16>, vector<16x128xf32> -> vector<16x128xf32>
    %c1 = arith.constant 1 : index
    %c0_5 = arith.constant 0 : index
    %c0_6 = arith.constant 0 : index
    %5 = vector.load %arg2[%c1, %c0_5, %c0_6] : memref<3x128x128xbf16, #tpu.memory_space<vmem>>, vector<1x128x128xbf16>
    %6 = vector.shape_cast %5 : vector<1x128x128xbf16> to vector<128x128xbf16>
    %cst_7 = arith.constant dense<0.000000e+00> : vector<16x128xf32>
    %7 = tpu.matmul %1, %6, %cst_7 {dimension_numbers = #tpu.dot_dimension_numbers<[1], [0], [0], [1], [0, 0, 1, 1], [], []>} : vector<16x128xbf16>, vector<128x128xbf16>, vector<16x128xf32> -> vector<16x128xf32>
    %c2 = arith.constant 2 : index
    %c0_8 = arith.constant 0 : index
    %c0_9 = arith.constant 0 : index
    %8 = vector.load %arg2[%c2, %c0_8, %c0_9] : memref<3x128x128xbf16, #tpu.memory_space<vmem>>, vector<1x128x128xbf16>
    %9 = vector.shape_cast %8 : vector<1x128x128xbf16> to vector<128x128xbf16>
    %cst_10 = arith.constant dense<0.000000e+00> : vector<16x128xf32>
    %10 = tpu.matmul %1, %9, %cst_10 {dimension_numbers = #tpu.dot_dimension_numbers<[1], [0], [0], [1], [0, 0, 1, 1], [], []>} : vector<16x128xbf16>, vector<128x128xbf16>, vector<16x128xf32> -> vector<16x128xf32>
    %11 = tpu.iota {dimensions = array<i32: 0>} : vector<16x128xi32>
    %c16_i32 = arith.constant 16 : i32
    %c0_i32 = arith.constant 0 : i32
    %12 = arith.cmpi eq, %c16_i32, %c0_i32 : i32
    %c1_i32 = arith.constant 1 : i32
    %13 = arith.select %12, %c1_i32, %c16_i32 : i32
    %14 = vector.broadcast %13 : i32 to vector<16x128xi32>
    %15 = arith.remsi %11, %14 : vector<16x128xi32>
    %c0_i32_11 = arith.constant 0 : i32
    %16 = vector.broadcast %c0_i32_11 : i32 to vector<16x128xi32>
    %17 = arith.cmpi ne, %15, %16 : vector<16x128xi32>
    %c0_i32_12 = arith.constant 0 : i32
    %18 = vector.broadcast %c0_i32_12 : i32 to vector<16x128xi32>
    %19 = arith.cmpi slt, %15, %18 : vector<16x128xi32>
    %c0_i32_13 = arith.constant 0 : i32
    %20 = arith.cmpi slt, %13, %c0_i32_13 : i32
    %21 = vector.broadcast %20 : i1 to vector<16x128xi1>
    %22 = vector.broadcast %21 : vector<16x128xi1> to vector<16x128xi1>
    %23 = arith.xori %19, %22 : vector<16x128xi1>
    %24 = arith.andi %23, %17 : vector<16x128xi1>
    %25 = vector.broadcast %13 : i32 to vector<16x128xi32>
    %26 = arith.addi %15, %25 : vector<16x128xi32>
    %27 = arith.select %24, %26, %15 : vector<16x128xi1>, vector<16x128xi32>
    %c0_i32_14 = arith.constant 0 : i32
    %28 = vector.broadcast %c0_i32_14 : i32 to vector<16x128xi32>
    %29 = arith.cmpi ne, %27, %28 : vector<16x128xi32>
    %c16_i32_15 = arith.constant 16 : i32
    %c0_i32_16 = arith.constant 0 : i32
    %30 = arith.cmpi eq, %c16_i32_15, %c0_i32_16 : i32
    %c1_i32_17 = arith.constant 1 : i32
    %31 = arith.select %30, %c1_i32_17, %c16_i32_15 : i32
    %32 = vector.broadcast %31 : i32 to vector<16x128xi32>
    %33 = arith.remsi %11, %32 : vector<16x128xi32>
    %c0_i32_18 = arith.constant 0 : i32
    %34 = vector.broadcast %c0_i32_18 : i32 to vector<16x128xi32>
    %35 = arith.cmpi ne, %33, %34 : vector<16x128xi32>
    %c0_i32_19 = arith.constant 0 : i32
    %36 = vector.broadcast %c0_i32_19 : i32 to vector<16x128xi32>
    %37 = arith.cmpi slt, %33, %36 : vector<16x128xi32>
    %c0_i32_20 = arith.constant 0 : i32
    %38 = arith.cmpi slt, %31, %c0_i32_20 : i32
    %39 = vector.broadcast %38 : i1 to vector<16x128xi1>
    %40 = vector.broadcast %39 : vector<16x128xi1> to vector<16x128xi1>
    %41 = arith.xori %37, %40 : vector<16x128xi1>
    %42 = arith.andi %41, %35 : vector<16x128xi1>
    %43 = vector.broadcast %31 : i32 to vector<16x128xi32>
    %44 = arith.addi %33, %43 : vector<16x128xi32>
    %45 = arith.select %42, %44, %33 : vector<16x128xi1>, vector<16x128xi32>
    %c15_i32 = arith.constant 15 : i32
    %46 = vector.broadcast %c15_i32 : i32 to vector<16x128xi32>
    %47 = arith.cmpi ne, %45, %46 : vector<16x128xi32>
    %c1_i32_21 = arith.constant 1 : i32
    %48 = tpu.dynamic_rotate %4 by %c1_i32_21 dim 0 : vector<16x128xf32>, i32 -> vector<16x128xf32>
    %c15_i32_22 = arith.constant 15 : i32
    %49 = tpu.dynamic_rotate %10 by %c15_i32_22 dim 0 : vector<16x128xf32>, i32 -> vector<16x128xf32>
    %cst_23 = arith.constant 0.000000e+00 : f32
    %50 = vector.broadcast %cst_23 : f32 to vector<16x128xf32>
    %51 = arith.select %29, %48, %50 : vector<16x128xi1>, vector<16x128xf32>
    %52 = arith.addf %7, %51 : vector<16x128xf32>
    %cst_24 = arith.constant 0.000000e+00 : f32
    %53 = vector.broadcast %cst_24 : f32 to vector<16x128xf32>
    %54 = arith.select %47, %49, %53 : vector<16x128xi1>, vector<16x128xf32>
    %55 = arith.addf %52, %54 : vector<16x128xf32>
    %56 = vector.shape_cast %55 : vector<16x128xf32> to vector<1x16x128xf32>
    %57 = arith.truncf %56 : vector<1x16x128xf32> to vector<1x16x128xbf16>
    %c0_25 = arith.constant 0 : index
    %c0_26 = arith.constant 0 : index
    %c0_27 = arith.constant 0 : index
    %58 = vector.load %arg3[%c0_25, %c0_26, %c0_27] : memref<1x16x128xbf16, #tpu.memory_space<vmem>>, vector<1x16x128xbf16>
    tpu.vector_store %arg3[%c0_25, %c0_26, %c0_27], %57 {strides = array<i32>} : memref<1x16x128xbf16, #tpu.memory_space<vmem>>, vector<1x16x128xbf16>,
    %cst_28 = arith.constant dense<0.000000e+00> : vector<128xf32>
    %59 = vector.multi_reduction <add>, %55, %cst_28 [0] : vector<16x128xf32> to vector<128xf32>
    %60 = vector.shape_cast %59 : vector<128xf32> to vector<1x128xf32>
    %61 = vector.shape_cast %60 : vector<1x128xf32> to vector<1x1x128xf32>
    %c0_29 = arith.constant 0 : index
    %c0_30 = arith.constant 0 : index
    %c0_31 = arith.constant 0 : index
    %62 = vector.load %arg4[%c0_29, %c0_30, %c0_31] : memref<1x1x128xf32, #tpu.memory_space<vmem>>, vector<1x1x128xf32>
    tpu.vector_store %arg4[%c0_29, %c0_30, %c0_31], %61 {strides = array<i32>} : memref<1x1x128xf32, #tpu.memory_space<vmem>>, vector<1x1x128xf32>,
    %63 = arith.mulf %55, %55 : vector<16x128xf32>
    %cst_32 = arith.constant dense<0.000000e+00> : vector<128xf32>
    %64 = vector.multi_reduction <add>, %63, %cst_32 [0] : vector<16x128xf32> to vector<128xf32>
    %65 = vector.shape_cast %64 : vector<128xf32> to vector<1x128xf32>
    %66 = vector.shape_cast %65 : vector<1x128xf32> to vector<1x1x128xf32>
    %c0_33 = arith.constant 0 : index
    %c0_34 = arith.constant 0 : index
    %c0_35 = arith.constant 0 : index
    %67 = vector.load %arg5[%c0_33, %c0_34, %c0_35] : memref<1x1x128xf32, #tpu.memory_space<vmem>>, vector<1x1x128xf32>
    tpu.vector_store %arg5[%c0_33, %c0_34, %c0_35], %66 {strides = array<i32>} : memref<1x1x128xf32, #tpu.memory_space<vmem>>, vector<1x1x128xf32>,
    return
  }
  func.func @transform_0(%arg0: i32) -> (i32, i32, i32) {
    %c0_i32 = arith.constant 0 : i32
    %c0_i32_0 = arith.constant 0 : i32
    %c0_i32_1 = arith.constant 0 : i32
    return %arg0, %c0_i32, %c0_i32_0 : i32, i32, i32
  }
  func.func @transform_1(%arg0: i32) -> (i32, i32, i32) {
    %c0_i32 = arith.constant 0 : i32
    %c0_i32_0 = arith.constant 0 : i32
    %c0_i32_1 = arith.constant 0 : i32
    %c0_i32_2 = arith.constant 0 : i32
    return %c0_i32, %c0_i32_0, %c0_i32_1 : i32, i32, i32
  }
  func.func @transform_2(%arg0: i32) -> (i32, i32, i32) {
    %c0_i32 = arith.constant 0 : i32
    %c0_i32_0 = arith.constant 0 : i32
    %c0_i32_1 = arith.constant 0 : i32
    return %arg0, %c0_i32, %c0_i32_0 : i32, i32, i32
  }
  func.func @transform_3(%arg0: i32) -> (i32, i32, i32) {
    %c0_i32 = arith.constant 0 : i32
    %c0_i32_0 = arith.constant 0 : i32
    %c0_i32_1 = arith.constant 0 : i32
    return %arg0, %c0_i32, %c0_i32_0 : i32, i32, i32
  }
  func.func @transform_4(%arg0: i32) -> (i32, i32, i32) {
    %c0_i32 = arith.constant 0 : i32
    %c0_i32_0 = arith.constant 0 : i32
    %c0_i32_1 = arith.constant 0 : i32
    return %arg0, %c0_i32, %c0_i32_0 : i32, i32, i32
  }
}

module attributes {stable_mosaic.version = 11 : i64} {
  func.func @_bn1_conv2_kernel(%arg0: i32, %arg1: memref<1x16x128xbf16, #tpu.memory_space<vmem>>, %arg2: memref<1x128xf32, #tpu.memory_space<vmem>>, %arg3: memref<1x128xf32, #tpu.memory_space<vmem>>, %arg4: memref<3x128x128xbf16, #tpu.memory_space<vmem>>, %arg5: memref<1x16x128xbf16, #tpu.memory_space<vmem>>, %arg6: memref<1x1x128xf32, #tpu.memory_space<vmem>>, %arg7: memref<1x1x128xf32, #tpu.memory_space<vmem>>) attributes {dimension_semantics = [#tpu.dimension_semantics<parallel>], iteration_bounds = array<i64: 2>, scalar_prefetch = 0 : i64, scratch_operands = 0 : i64, tpu.core_type = #tpu.core_type<tc>, window_params = [{transform_indices = @transform_0, window_bounds = array<i64: 1, 16, 128>}, {pipeline_mode = #tpu.pipeline_mode<synchronous>, transform_indices = @transform_1, window_bounds = array<i64: 1, 128>}, {pipeline_mode = #tpu.pipeline_mode<synchronous>, transform_indices = @transform_2, window_bounds = array<i64: 1, 128>}, {pipeline_mode = #tpu.pipeline_mode<synchronous>, transform_indices = @transform_3, window_bounds = array<i64: 3, 128, 128>}, {transform_indices = @transform_4, window_bounds = array<i64: 1, 16, 128>}, {transform_indices = @transform_5, window_bounds = array<i64: 1, 1, 128>}, {transform_indices = @transform_6, window_bounds = array<i64: 1, 1, 128>}]} {
    %c0 = arith.constant 0 : index
    %c0_0 = arith.constant 0 : index
    %c0_1 = arith.constant 0 : index
    %0 = vector.load %arg1[%c0, %c0_0, %c0_1] : memref<1x16x128xbf16, #tpu.memory_space<vmem>>, vector<1x16x128xbf16>
    %1 = arith.extf %0 : vector<1x16x128xbf16> to vector<1x16x128xf32>
    %c0_2 = arith.constant 0 : index
    %c0_3 = arith.constant 0 : index
    %2 = vector.load %arg2[%c0_2, %c0_3] : memref<1x128xf32, #tpu.memory_space<vmem>>, vector<1x128xf32>
    %3 = vector.shape_cast %2 : vector<1x128xf32> to vector<1x1x128xf32>
    %4 = vector.broadcast %3 : vector<1x1x128xf32> to vector<1x16x128xf32>
    %5 = arith.mulf %1, %4 : vector<1x16x128xf32>
    %c0_4 = arith.constant 0 : index
    %c0_5 = arith.constant 0 : index
    %6 = vector.load %arg3[%c0_4, %c0_5] : memref<1x128xf32, #tpu.memory_space<vmem>>, vector<1x128xf32>
    %7 = vector.shape_cast %6 : vector<1x128xf32> to vector<1x1x128xf32>
    %8 = vector.broadcast %7 : vector<1x1x128xf32> to vector<1x16x128xf32>
    %9 = arith.addf %5, %8 : vector<1x16x128xf32>
    %cst = arith.constant 0.000000e+00 : f32
    %10 = vector.broadcast %cst : f32 to vector<1x16x128xf32>
    %11 = arith.maximumf %9, %10 : vector<1x16x128xf32>
    %12 = vector.shape_cast %11 : vector<1x16x128xf32> to vector<16x128xf32>
    %13 = arith.truncf %12 : vector<16x128xf32> to vector<16x128xbf16>
    %c0_6 = arith.constant 0 : index
    %c0_7 = arith.constant 0 : index
    %c0_8 = arith.constant 0 : index
    %14 = vector.load %arg4[%c0_6, %c0_7, %c0_8] : memref<3x128x128xbf16, #tpu.memory_space<vmem>>, vector<1x128x128xbf16>
    %15 = vector.shape_cast %14 : vector<1x128x128xbf16> to vector<128x128xbf16>
    %cst_9 = arith.constant dense<0.000000e+00> : vector<16x128xf32>
    %16 = tpu.matmul %13, %15, %cst_9 {dimension_numbers = #tpu.dot_dimension_numbers<[1], [0], [0], [1], [0, 0, 1, 1], [], []>} : vector<16x128xbf16>, vector<128x128xbf16>, vector<16x128xf32> -> vector<16x128xf32>
    %c1 = arith.constant 1 : index
    %c0_10 = arith.constant 0 : index
    %c0_11 = arith.constant 0 : index
    %17 = vector.load %arg4[%c1, %c0_10, %c0_11] : memref<3x128x128xbf16, #tpu.memory_space<vmem>>, vector<1x128x128xbf16>
    %18 = vector.shape_cast %17 : vector<1x128x128xbf16> to vector<128x128xbf16>
    %cst_12 = arith.constant dense<0.000000e+00> : vector<16x128xf32>
    %19 = tpu.matmul %13, %18, %cst_12 {dimension_numbers = #tpu.dot_dimension_numbers<[1], [0], [0], [1], [0, 0, 1, 1], [], []>} : vector<16x128xbf16>, vector<128x128xbf16>, vector<16x128xf32> -> vector<16x128xf32>
    %c2 = arith.constant 2 : index
    %c0_13 = arith.constant 0 : index
    %c0_14 = arith.constant 0 : index
    %20 = vector.load %arg4[%c2, %c0_13, %c0_14] : memref<3x128x128xbf16, #tpu.memory_space<vmem>>, vector<1x128x128xbf16>
    %21 = vector.shape_cast %20 : vector<1x128x128xbf16> to vector<128x128xbf16>
    %cst_15 = arith.constant dense<0.000000e+00> : vector<16x128xf32>
    %22 = tpu.matmul %13, %21, %cst_15 {dimension_numbers = #tpu.dot_dimension_numbers<[1], [0], [0], [1], [0, 0, 1, 1], [], []>} : vector<16x128xbf16>, vector<128x128xbf16>, vector<16x128xf32> -> vector<16x128xf32>
    %23 = tpu.iota {dimensions = array<i32: 0>} : vector<16x128xi32>
    %c16_i32 = arith.constant 16 : i32
    %c0_i32 = arith.constant 0 : i32
    %24 = arith.cmpi eq, %c16_i32, %c0_i32 : i32
    %c1_i32 = arith.constant 1 : i32
    %25 = arith.select %24, %c1_i32, %c16_i32 : i32
    %26 = vector.broadcast %25 : i32 to vector<16x128xi32>
    %27 = arith.remsi %23, %26 : vector<16x128xi32>
    %c0_i32_16 = arith.constant 0 : i32
    %28 = vector.broadcast %c0_i32_16 : i32 to vector<16x128xi32>
    %29 = arith.cmpi ne, %27, %28 : vector<16x128xi32>
    %c0_i32_17 = arith.constant 0 : i32
    %30 = vector.broadcast %c0_i32_17 : i32 to vector<16x128xi32>
    %31 = arith.cmpi slt, %27, %30 : vector<16x128xi32>
    %c0_i32_18 = arith.constant 0 : i32
    %32 = arith.cmpi slt, %25, %c0_i32_18 : i32
    %33 = vector.broadcast %32 : i1 to vector<16x128xi1>
    %34 = vector.broadcast %33 : vector<16x128xi1> to vector<16x128xi1>
    %35 = arith.xori %31, %34 : vector<16x128xi1>
    %36 = arith.andi %35, %29 : vector<16x128xi1>
    %37 = vector.broadcast %25 : i32 to vector<16x128xi32>
    %38 = arith.addi %27, %37 : vector<16x128xi32>
    %39 = arith.select %36, %38, %27 : vector<16x128xi1>, vector<16x128xi32>
    %c0_i32_19 = arith.constant 0 : i32
    %40 = vector.broadcast %c0_i32_19 : i32 to vector<16x128xi32>
    %41 = arith.cmpi ne, %39, %40 : vector<16x128xi32>
    %c16_i32_20 = arith.constant 16 : i32
    %c0_i32_21 = arith.constant 0 : i32
    %42 = arith.cmpi eq, %c16_i32_20, %c0_i32_21 : i32
    %c1_i32_22 = arith.constant 1 : i32
    %43 = arith.select %42, %c1_i32_22, %c16_i32_20 : i32
    %44 = vector.broadcast %43 : i32 to vector<16x128xi32>
    %45 = arith.remsi %23, %44 : vector<16x128xi32>
    %c0_i32_23 = arith.constant 0 : i32
    %46 = vector.broadcast %c0_i32_23 : i32 to vector<16x128xi32>
    %47 = arith.cmpi ne, %45, %46 : vector<16x128xi32>
    %c0_i32_24 = arith.constant 0 : i32
    %48 = vector.broadcast %c0_i32_24 : i32 to vector<16x128xi32>
    %49 = arith.cmpi slt, %45, %48 : vector<16x128xi32>
    %c0_i32_25 = arith.constant 0 : i32
    %50 = arith.cmpi slt, %43, %c0_i32_25 : i32
    %51 = vector.broadcast %50 : i1 to vector<16x128xi1>
    %52 = vector.broadcast %51 : vector<16x128xi1> to vector<16x128xi1>
    %53 = arith.xori %49, %52 : vector<16x128xi1>
    %54 = arith.andi %53, %47 : vector<16x128xi1>
    %55 = vector.broadcast %43 : i32 to vector<16x128xi32>
    %56 = arith.addi %45, %55 : vector<16x128xi32>
    %57 = arith.select %54, %56, %45 : vector<16x128xi1>, vector<16x128xi32>
    %c15_i32 = arith.constant 15 : i32
    %58 = vector.broadcast %c15_i32 : i32 to vector<16x128xi32>
    %59 = arith.cmpi ne, %57, %58 : vector<16x128xi32>
    %c1_i32_26 = arith.constant 1 : i32
    %60 = tpu.dynamic_rotate %16 by %c1_i32_26 dim 0 : vector<16x128xf32>, i32 -> vector<16x128xf32>
    %c15_i32_27 = arith.constant 15 : i32
    %61 = tpu.dynamic_rotate %22 by %c15_i32_27 dim 0 : vector<16x128xf32>, i32 -> vector<16x128xf32>
    %cst_28 = arith.constant 0.000000e+00 : f32
    %62 = vector.broadcast %cst_28 : f32 to vector<16x128xf32>
    %63 = arith.select %41, %60, %62 : vector<16x128xi1>, vector<16x128xf32>
    %64 = arith.addf %19, %63 : vector<16x128xf32>
    %cst_29 = arith.constant 0.000000e+00 : f32
    %65 = vector.broadcast %cst_29 : f32 to vector<16x128xf32>
    %66 = arith.select %59, %61, %65 : vector<16x128xi1>, vector<16x128xf32>
    %67 = arith.addf %64, %66 : vector<16x128xf32>
    %68 = vector.shape_cast %67 : vector<16x128xf32> to vector<1x16x128xf32>
    %69 = arith.truncf %68 : vector<1x16x128xf32> to vector<1x16x128xbf16>
    %c0_30 = arith.constant 0 : index
    %c0_31 = arith.constant 0 : index
    %c0_32 = arith.constant 0 : index
    %70 = vector.load %arg5[%c0_30, %c0_31, %c0_32] : memref<1x16x128xbf16, #tpu.memory_space<vmem>>, vector<1x16x128xbf16>
    tpu.vector_store %arg5[%c0_30, %c0_31, %c0_32], %69 {strides = array<i32>} : memref<1x16x128xbf16, #tpu.memory_space<vmem>>, vector<1x16x128xbf16>,
    %cst_33 = arith.constant dense<0.000000e+00> : vector<128xf32>
    %71 = vector.multi_reduction <add>, %67, %cst_33 [0] : vector<16x128xf32> to vector<128xf32>
    %72 = vector.shape_cast %71 : vector<128xf32> to vector<1x128xf32>
    %73 = vector.shape_cast %72 : vector<1x128xf32> to vector<1x1x128xf32>
    %c0_34 = arith.constant 0 : index
    %c0_35 = arith.constant 0 : index
    %c0_36 = arith.constant 0 : index
    %74 = vector.load %arg6[%c0_34, %c0_35, %c0_36] : memref<1x1x128xf32, #tpu.memory_space<vmem>>, vector<1x1x128xf32>
    tpu.vector_store %arg6[%c0_34, %c0_35, %c0_36], %73 {strides = array<i32>} : memref<1x1x128xf32, #tpu.memory_space<vmem>>, vector<1x1x128xf32>,
    %75 = arith.mulf %67, %67 : vector<16x128xf32>
    %cst_37 = arith.constant dense<0.000000e+00> : vector<128xf32>
    %76 = vector.multi_reduction <add>, %75, %cst_37 [0] : vector<16x128xf32> to vector<128xf32>
    %77 = vector.shape_cast %76 : vector<128xf32> to vector<1x128xf32>
    %78 = vector.shape_cast %77 : vector<1x128xf32> to vector<1x1x128xf32>
    %c0_38 = arith.constant 0 : index
    %c0_39 = arith.constant 0 : index
    %c0_40 = arith.constant 0 : index
    %79 = vector.load %arg7[%c0_38, %c0_39, %c0_40] : memref<1x1x128xf32, #tpu.memory_space<vmem>>, vector<1x1x128xf32>
    tpu.vector_store %arg7[%c0_38, %c0_39, %c0_40], %78 {strides = array<i32>} : memref<1x1x128xf32, #tpu.memory_space<vmem>>, vector<1x1x128xf32>,
    return
  }
  func.func @transform_0(%arg0: i32) -> (i32, i32, i32) {
    %c0_i32 = arith.constant 0 : i32
    %c0_i32_0 = arith.constant 0 : i32
    %c0_i32_1 = arith.constant 0 : i32
    return %arg0, %c0_i32, %c0_i32_0 : i32, i32, i32
  }
  func.func @transform_1(%arg0: i32) -> (i32, i32) {
    %c0_i32 = arith.constant 0 : i32
    %c0_i32_0 = arith.constant 0 : i32
    %c0_i32_1 = arith.constant 0 : i32
    return %c0_i32, %c0_i32_0 : i32, i32
  }
  func.func @transform_2(%arg0: i32) -> (i32, i32) {
    %c0_i32 = arith.constant 0 : i32
    %c0_i32_0 = arith.constant 0 : i32
    %c0_i32_1 = arith.constant 0 : i32
    return %c0_i32, %c0_i32_0 : i32, i32
  }
  func.func @transform_3(%arg0: i32) -> (i32, i32, i32) {
    %c0_i32 = arith.constant 0 : i32
    %c0_i32_0 = arith.constant 0 : i32
    %c0_i32_1 = arith.constant 0 : i32
    %c0_i32_2 = arith.constant 0 : i32
    return %c0_i32, %c0_i32_0, %c0_i32_1 : i32, i32, i32
  }
  func.func @transform_4(%arg0: i32) -> (i32, i32, i32) {
    %c0_i32 = arith.constant 0 : i32
    %c0_i32_0 = arith.constant 0 : i32
    %c0_i32_1 = arith.constant 0 : i32
    return %arg0, %c0_i32, %c0_i32_0 : i32, i32, i32
  }
  func.func @transform_5(%arg0: i32) -> (i32, i32, i32) {
    %c0_i32 = arith.constant 0 : i32
    %c0_i32_0 = arith.constant 0 : i32
    %c0_i32_1 = arith.constant 0 : i32
    return %arg0, %c0_i32, %c0_i32_0 : i32, i32, i32
  }
  func.func @transform_6(%arg0: i32) -> (i32, i32, i32) {
    %c0_i32 = arith.constant 0 : i32
    %c0_i32_0 = arith.constant 0 : i32
    %c0_i32_1 = arith.constant 0 : i32
    return %arg0, %c0_i32, %c0_i32_0 : i32, i32, i32
  }
}

module attributes {stable_mosaic.version = 11 : i64} {
  func.func @_bn2_add_relu_kernel(%arg0: i32, %arg1: memref<1x16x128xbf16, #tpu.memory_space<vmem>>, %arg2: memref<1x16x128xbf16, #tpu.memory_space<vmem>>, %arg3: memref<1x128xf32, #tpu.memory_space<vmem>>, %arg4: memref<1x128xf32, #tpu.memory_space<vmem>>, %arg5: memref<1x16x128xf32, #tpu.memory_space<vmem>>) attributes {dimension_semantics = [#tpu.dimension_semantics<parallel>], iteration_bounds = array<i64: 2>, scalar_prefetch = 0 : i64, scratch_operands = 0 : i64, tpu.core_type = #tpu.core_type<tc>, window_params = [{transform_indices = @transform_0, window_bounds = array<i64: 1, 16, 128>}, {transform_indices = @transform_1, window_bounds = array<i64: 1, 16, 128>}, {pipeline_mode = #tpu.pipeline_mode<synchronous>, transform_indices = @transform_2, window_bounds = array<i64: 1, 128>}, {pipeline_mode = #tpu.pipeline_mode<synchronous>, transform_indices = @transform_3, window_bounds = array<i64: 1, 128>}, {transform_indices = @transform_4, window_bounds = array<i64: 1, 16, 128>}]} {
    %c0 = arith.constant 0 : index
    %c0_0 = arith.constant 0 : index
    %c0_1 = arith.constant 0 : index
    %0 = vector.load %arg1[%c0, %c0_0, %c0_1] : memref<1x16x128xbf16, #tpu.memory_space<vmem>>, vector<1x16x128xbf16>
    %1 = arith.extf %0 : vector<1x16x128xbf16> to vector<1x16x128xf32>
    %c0_2 = arith.constant 0 : index
    %c0_3 = arith.constant 0 : index
    %c0_4 = arith.constant 0 : index
    %2 = vector.load %arg2[%c0_2, %c0_3, %c0_4] : memref<1x16x128xbf16, #tpu.memory_space<vmem>>, vector<1x16x128xbf16>
    %3 = arith.extf %2 : vector<1x16x128xbf16> to vector<1x16x128xf32>
    %c0_5 = arith.constant 0 : index
    %c0_6 = arith.constant 0 : index
    %4 = vector.load %arg3[%c0_5, %c0_6] : memref<1x128xf32, #tpu.memory_space<vmem>>, vector<1x128xf32>
    %5 = vector.shape_cast %4 : vector<1x128xf32> to vector<1x1x128xf32>
    %6 = vector.broadcast %5 : vector<1x1x128xf32> to vector<1x16x128xf32>
    %7 = arith.mulf %1, %6 : vector<1x16x128xf32>
    %c0_7 = arith.constant 0 : index
    %c0_8 = arith.constant 0 : index
    %8 = vector.load %arg4[%c0_7, %c0_8] : memref<1x128xf32, #tpu.memory_space<vmem>>, vector<1x128xf32>
    %9 = vector.shape_cast %8 : vector<1x128xf32> to vector<1x1x128xf32>
    %10 = vector.broadcast %9 : vector<1x1x128xf32> to vector<1x16x128xf32>
    %11 = arith.addf %7, %10 : vector<1x16x128xf32>
    %12 = arith.addf %11, %3 : vector<1x16x128xf32>
    %cst = arith.constant 0.000000e+00 : f32
    %13 = vector.broadcast %cst : f32 to vector<1x16x128xf32>
    %14 = arith.maximumf %12, %13 : vector<1x16x128xf32>
    %c0_9 = arith.constant 0 : index
    %c0_10 = arith.constant 0 : index
    %c0_11 = arith.constant 0 : index
    %15 = vector.load %arg5[%c0_9, %c0_10, %c0_11] : memref<1x16x128xf32, #tpu.memory_space<vmem>>, vector<1x16x128xf32>
    tpu.vector_store %arg5[%c0_9, %c0_10, %c0_11], %14 {strides = array<i32>} : memref<1x16x128xf32, #tpu.memory_space<vmem>>, vector<1x16x128xf32>,
    return
  }
  func.func @transform_0(%arg0: i32) -> (i32, i32, i32) {
    %c0_i32 = arith.constant 0 : i32
    %c0_i32_0 = arith.constant 0 : i32
    %c0_i32_1 = arith.constant 0 : i32
    return %arg0, %c0_i32, %c0_i32_0 : i32, i32, i32
  }
  func.func @transform_1(%arg0: i32) -> (i32, i32, i32) {
    %c0_i32 = arith.constant 0 : i32
    %c0_i32_0 = arith.constant 0 : i32
    %c0_i32_1 = arith.constant 0 : i32
    return %arg0, %c0_i32, %c0_i32_0 : i32, i32, i32
  }
  func.func @transform_2(%arg0: i32) -> (i32, i32) {
    %c0_i32 = arith.constant 0 : i32
    %c0_i32_0 = arith.constant 0 : i32
    %c0_i32_1 = arith.constant 0 : i32
    return %c0_i32, %c0_i32_0 : i32, i32
  }
  func.func @transform_3(%arg0: i32) -> (i32, i32) {
    %c0_i32 = arith.constant 0 : i32
    %c0_i32_0 = arith.constant 0 : i32
    %c0_i32_1 = arith.constant 0 : i32
    return %c0_i32, %c0_i32_0 : i32, i32
  }
  func.func @transform_4(%arg0: i32) -> (i32, i32, i32) {
    %c0_i32 = arith.constant 0 : i32
    %c0_i32_0 = arith.constant 0 : i32
    %c0_i32_1 = arith.constant 0 : i32
    return %arg0, %c0_i32, %c0_i32_0 : i32, i32, i32
  }
}

</mosaic_0001>

<bundles_post_ra>
// kernel: tile.23
= control target key start
LH: loop header
LB: loop body
LE: loop exit
PB: predicated region body
PF: predicated region fallthrough
CT: control target
= control target key end

     0   :  { %s28_s0 = inlined_call_operand.vmem [shape: f32[8], index: 0, kind: input, shape index: {}]   ;;  %s29_s1 = inlined_call_operand.vmem [shape: f32[16,8], index: 1, kind: output, shape index: {}]  }
   0x1   :  { %v4_v0 = vld [vmem:[%s28_s0] ss:$0 sm:$0xff] }
   0x2   :  { %5 = vst [vmem:[%s29_s1] sm:$0xff] %v4_v0  ;;  %8 = vst [vmem:[%s29_s1 + $0x8] sm:$0xff] %v4_v0 }

// kernel: tile.24
= control target key start
LH: loop header
LB: loop body
LE: loop exit
PB: predicated region body
PF: predicated region fallthrough
CT: control target
= control target key end

     0   :  { %s133_s10 = smov 120   ;;  %s134_s11 = smov 104   ;;  %vm3_vm0 = vcmask 64512   ;;  %vm9_vm1 = vcmask 1048512   ;;  %vm15_vm2 = vcmask 982912   ;;  %vm21_vm3 = vcmask 917312   ;;  %s209_s0 = inlined_call_operand.vmem [shape: f32[16,8], index: 0, kind: input, shape index: {}]   ;;  %s210_s1 = inlined_call_operand.vmem [shape: f32[1,128], index: 1, kind: output, shape index: {}]  }
   0x1   :  { %v103_v0 = vld [vmem:[%s209_s0 + $0xf] sm:$0x1]   ;;  %v105_v1 = vld [vmem:[%s209_s0 + $0xd] sm:$0x1]   ;;  %v104_v2 = vld [vmem:[%s209_s0 + $0xe] sm:$0x1]  }
   0x2   :  { %7 = vrot.lane.b32.xlu0 %v103_v0, %s133_s10  ;;  %19 = vrot.lane.b32.xlu1 %v105_v1, %s134_s11  ;;  %v106_v3 = vld [vmem:[%s209_s0 + $0xc] sm:$0x1]   ;;  %s135_s16 = smov 112   ;;  %s136_s17 = smov 96   ;;  %v107_v4 = vld [vmem:[%s209_s0 + $0xb] sm:$0x1]  }
   0x3   :  { %v108_v5 = vld [vmem:[%s209_s0 + $0xa] sm:$0x1]   ;;  %v2_v6 = vld [vmem:[%s209_s0] sm:$0x1]   ;;  %s137_s24 = smov 88   ;;  %s138_s25 = smov 80  }
   0x4   :  { %4 = vst.msk [vmem:[#allocation0] sm:$0x1] %vm3_vm0, %v2_v6   ;;  %v109_v7 = vld [vmem:[%s209_s0 + $0x9] sm:$0x1]   ;;  %v110_v8 = vld [vmem:[%s209_s0 + $0x8] sm:$0x1]  }
   0x5   :  { %s139_s30 = smov 72   ;;  %s140_s2 = smov 64   ;;  %v111_v9 = vld [vmem:[%s209_s0 + $0x7] sm:$0x1]   ;;  %v112_v10 = vld [vmem:[%s209_s0 + $0x6] sm:$0x1]  }
   0x6   :  { %13 = vrot.lane.b32.xlu0 %v104_v2, %s135_s16  ;;  %25 = vrot.lane.b32.xlu1 %v106_v3, %s136_s17  ;;  %s141_s7 = smov 56   ;;  %s142_s8 = smov 48   ;;  %v113_v11 = vld [vmem:[%s209_s0 + $0x5] sm:$0x1]   ;;  %v114_v12 = vld [vmem:[%s209_s0 + $0x4] sm:$0x1]  }
   0x7   :  { %s143_s13 = smov 40   ;;  %s144_s14 = smov 32   ;;  %v115_v13 = vld [vmem:[%s209_s0 + $0x3] sm:$0x1]   ;;  %v116_v14 = vld [vmem:[%s209_s0 + $0x2] sm:$0x1]  }
   0x8   :  { %s145_s19 = smov 24   ;;  %s146_s20 = smov 16   ;;  %v117_v15 = vld [vmem:[%s209_s0 + $0x1] sm:$0x1]   ;;  %vm27_vm4 = vcmask 851712   ;;  %vm33_vm5 = vcmask 786112  }
   0x9   :  { %s147_s0 = smov 8   ;;  %vm39_vm6 = vcmask 720512   ;;  %vm45_vm7 = vcmask 654912   ;;  %vm51_vm8 = vcmask 589312   ;;  %vm57_vm9 = vcmask 523712  }
   0xa   :  { %31 = vrot.lane.b32.xlu0 %v107_v4, %s137_s24  ;;  %37 = vrot.lane.b32.xlu1 %v108_v5, %s138_s25  ;;  %vm63_vm10 = vcmask 458112   ;;  %vm69_vm11 = vcmask 392512   ;;  %vm75_vm12 = vcmask 326912   ;;  %vm81_vm13 = vcmask 261312  }
   0xb   :  { %vm87_vm14 = vcmask 195712   ;;  %vm93_vm15 = vcmask 130112  }
   0xe   :  { %43 = vrot.lane.b32.xlu0 %v109_v7, %s139_s30  ;;  %49 = vrot.lane.b32.xlu1 %v110_v8, %s140_s2 }
  0x12   :  { %55 = vrot.lane.b32.xlu0 %v111_v9, %s141_s7  ;;  %61 = vrot.lane.b32.xlu1 %v112_v10, %s142_s8 }
  0x16   :  { %67 = vrot.lane.b32.xlu0 %v113_v11, %s143_s13  ;;  %73 = vrot.lane.b32.xlu1 %v114_v12, %s144_s14 }
  0x1a   :  { %79 = vrot.lane.b32.xlu0 %v115_v13, %s145_s19  ;;  %85 = vrot.lane.b32.xlu1 %v116_v14, %s146_s20 }
  0x1e   :  { %91 = vrot.lane.b32.xlu0 %v117_v15, %s147_s0 }
  0x74   :  { %v8_v16 = vpop.permute.xlu0 %7   ;;  %v20_v17 = vpop.permute.xlu1 %19  }
  0x75   :  { %10 = vst.msk [vmem:[#allocation0] sm:$0x1] %vm9_vm1, %v8_v16  }
  0x78   :  { %v14_v18 = vpop.permute.xlu0 %13   ;;  %v26_v19 = vpop.permute.xlu1 %25  }
  0x79   :  { %16 = vst.msk [vmem:[#allocation0] sm:$0x1] %vm15_vm2, %v14_v18  }
  0x7a   :  { %22 = vst.msk [vmem:[#allocation0] sm:$0x1] %vm21_vm3, %v20_v17  }
  0x7b   :  { %28 = vst.msk [vmem:[#allocation0] sm:$0x1] %vm27_vm4, %v26_v19  }
  0x7c   :  { %v32_v20 = vpop.permute.xlu0 %31   ;;  %v38_v21 = vpop.permute.xlu1 %37  }
  0x7d   :  { %34 = vst.msk [vmem:[#allocation0] sm:$0x1] %vm33_vm5, %v32_v20  }
  0x7e   :  { %40 = vst.msk [vmem:[#allocation0] sm:$0x1] %vm39_vm6, %v38_v21  }
  0x80   :  { %v44_v22 = vpop.permute.xlu0 %43   ;;  %v50_v23 = vpop.permute.xlu1 %49  }
  0x81   :  { %46 = vst.msk [vmem:[#allocation0] sm:$0x1] %vm45_vm7, %v44_v22  }
  0x82   :  { %52 = vst.msk [vmem:[#allocation0] sm:$0x1] %vm51_vm8, %v50_v23  }
  0x84   :  { %v56_v24 = vpop.permute.xlu0 %55   ;;  %v62_v25 = vpop.permute.xlu1 %61  }
  0x85   :  { %58 = vst.msk [vmem:[#allocation0] sm:$0x1] %vm57_vm9, %v56_v24  }
  0x86   :  { %64 = vst.msk [vmem:[#allocation0] sm:$0x1] %vm63_vm10, %v62_v25  }
  0x88   :  { %v68_v26 = vpop.permute.xlu0 %67   ;;  %v74_v27 = vpop.permute.xlu1 %73  }
  0x89   :  { %70 = vst.msk [vmem:[#allocation0] sm:$0x1] %vm69_vm11, %v68_v26  }
  0x8a   :  { %76 = vst.msk [vmem:[#allocation0] sm:$0x1] %vm75_vm12, %v74_v27  }
  0x8c   :  { %v80_v28 = vpop.permute.xlu0 %79   ;;  %v86_v29 = vpop.permute.xlu1 %85  }
  0x8d   :  { %82 = vst.msk [vmem:[#allocation0] sm:$0x1] %vm81_vm13, %v80_v28  }
  0x8e   :  { %88 = vst.msk [vmem:[#allocation0] sm:$0x1] %vm87_vm14, %v86_v29  }
  0x90   :  { %v92_v30 = vpop.permute.xlu0 %91  }
  0x91   :  { %94 = vst.msk [vmem:[#allocation0] sm:$0x1] %vm93_vm15, %v92_v30  }
  0x98   :  { %v99_v31 = vld [vmem:[#allocation0] sm:$0x1] }
  0x99   :  { %102 = vst [vmem:[%s210_s1] sm:$0x1] %v99_v31 }

// kernel: basic_block_pallas.3
= control target key start
LH: loop header
LB: loop body
LE: loop exit
PB: predicated region body
PF: predicated region fallthrough
CT: control target
= control target key end

     0   :  { %s957_s15 = smov 0   ;;  %s1093_s0 = inlined_call_operand.vmem [shape: bf16[2,16,128], index: 0, kind: input, shape index: {}]   ;;  %s1094_s1 = inlined_call_operand.vmem [shape: bf16[3,128,128], index: 1, kind: input, shape index: {}]   ;;  %s1095_s2 = inlined_call_operand.vmem [shape: bf16[2,16,128], index: 2, kind: output, shape index: {0}]   ;;  %s1096_s3 = inlined_call_operand.vmem [shape: f32[2,1,128], index: 3, kind: output, shape index: {1}]   ;;  %s1097_s4 = inlined_call_operand.vmem [shape: f32[2,1,128], index: 4, kind: output, shape index: {2}]  }
   0x1 LB: > { %s721_s16 = sadd.s32 4294967295, %s928_s15   ;;  %p725_p0 = scmp.ge.s32.totalorder %s928_s15, 1  ;;  %s928_s15 = sphi %s957_s15, %s15_s15  }
   0x2   : > { %p167_p1 = scmp.lt.s32.totalorder %s928_s15, 3 }
   0x4   : > { %p168_p2 = pnand %p725_p0, %p167_p1 }
   0x5   : > { %p199_p3 = scmp.lt.s32.totalorder (!%p168_p2), %s721_s16, 1 }
   0x6   : > { %171 = sbr.rel (%p168_p2) target bundleno = 294 (0x126), region = 28 }
   0xb   : > { %v897_v0 = vld [vmem:[%s1094_s1 + $0x38] sm:$0xff]   ;;  %v930_v1 = vmov 0.0   ;;  %v898_v2 = vld [vmem:[%s1094_s1 + $0x30] sm:$0xff]   ;;  %vm931_vm0 = vmmov 0   ;;  %s1099_s16 = smov (!%p199_p3, %s721_s16), 1  ;;  %v899_v3 = vld [vmem:[%s1094_s1 + $0x28] sm:$0xff]   ;;  %v452_v34 = vlaneseq }
   0xc   : > { %827 = vmatprep.subr.bf16.mxu0 %v930_v1  ;;  %847 = vmatprep.subr.bf16.mxu1 %v930_v1  ;;  %s791_s23 = sshll.u32 %s1099_s16, 3  ;;  %v904_v4 = vld [vmem:[%s1094_s1 + $0xb8] sm:$0xff]   ;;  %v906_v5 = vld [vmem:[%s1094_s1 + $0xb0] sm:$0xff]   ;;  %v900_v6 = vld [vmem:[%s1094_s1 + $0x20] sm:$0xff]   ;;  %s214_s5 = scalar_lea.vmem %s1097_s4, %s1099_s16 }
   0xd   : > { %828 = vmatpush3.bf16.msra.mxu0 %v897_v0  ;;  %843 = vmatprep.mubr.msk.bf16.mxu0 %vm931_vm0, %v930_v1  ;;  %s203_s30 = scalar_lea.vmem %s1093_s0, %s791_s23  ;;  %v908_v7 = vld [vmem:[%s1094_s1 + $0xa8] sm:$0xff]   ;;  %v901_v8 = vld [vmem:[%s1094_s1 + $0x18] sm:$0xff]   ;;  %v910_v9 = vld [vmem:[%s1094_s1 + $0xa0] sm:$0xff]   ;;  %v453_v35 = vshrl.u32 %v452_v34, 7  ;;  %s208_s25 = scalar_lea.vmem %s1095_s2, %s791_s23 }
   0xe   : > { %829 = vmatprep.subr.bf16.mxu0 %v930_v1  ;;  %863 = vmatprep.mubr.msk.bf16.mxu1 %vm931_vm0, %v930_v1  ;;  %v902_v10 = vld [vmem:[%s1094_s1 + $0x10] sm:$0xff]   ;;  %v912_v11 = vld [vmem:[%s1094_s1 + $0x98] sm:$0xff]   ;;  %v903_v12 = vld [vmem:[%s1094_s1 + $0x8] sm:$0xff]   ;;  %s211_s23 = scalar_lea.vmem %s1096_s3, %s1099_s16 }
   0xf   : > { %848 = vmatpush3.bf16.msra.mxu1 %v904_v4  ;;  %v914_v13 = vld [vmem:[%s1094_s1 + $0x90] sm:$0xff]   ;;  %v905_v14 = vld [vmem:[%s1094_s1] sm:$0xff]   ;;  %v916_v16 = vld [vmem:[%s1094_s1 + $0x88] sm:$0xff]   ;;  %v459_v37 = vand.u32 15, %v453_v35  ;;  %vm485_vm1 = vcmp.lt.s32.totalorder %v453_v35, 1  ;;  %v454_v39 = vadd.s32 8, %v453_v35 }
  0x10   : > { %849 = vmatprep.subr.bf16.mxu1 %v930_v1  ;;  %v907_v15 = vld [vmem:[%s203_s30] sm:$0xff]   ;;  %v909_v17 = vld [vmem:[%s1094_s1 + $0x78] sm:$0xff]   ;;  %v911_v19 = vld [vmem:[%s1094_s1 + $0x70] sm:$0xff]   ;;  %vm490_vm3 = vcmp.lt.s32.totalorder %v453_v35, 7 }
  0x11   : > { %830 = vmatpush3.bf16.msra.mxu0 %v898_v2  ;;  %v918_v18 = vld [vmem:[%s1094_s1 + $0x80] sm:$0xff]   ;;  %v913_v20 = vld [vmem:[%s1094_s1 + $0x68] sm:$0xff]   ;;  %v917_v22 = vld [vmem:[%s1094_s1 + $0x58] sm:$0xff]   ;;  %vm479_vm2 = vcmp.ne.s32.totalorder %v459_v37, 0  ;;  %v466_v43 = vand.u32 15, %v454_v39 }
  0x12   : > { %831 = vmatprep.subr.bf16.mxu0 %v930_v1  ;;  %v915_v21 = vld [vmem:[%s1094_s1 + $0x60] sm:$0xff]   ;;  %v919_v23 = vld [vmem:[%s1094_s1 + $0x50] sm:$0xff]   ;;  %v920_v24 = vld [vmem:[%s1094_s1 + $0x48] sm:$0xff]  }
  0x13   : > { %850 = vmatpush3.bf16.msra.mxu1 %v906_v5  ;;  %v921_v25 = vld [vmem:[%s1094_s1 + $0x40] sm:$0xff]   ;;  %vm482_vm4 = vcmp.ne.s32.totalorder %v466_v43, 15 }
  0x14   : > { %851 = vmatprep.subr.bf16.mxu1 %v930_v1 }
  0x15   : > { %832 = vmatpush3.bf16.msra.mxu0 %v899_v3 }
  0x16   : > { %833 = vmatprep.subr.bf16.mxu0 %v930_v1 }
  0x17   : > { %852 = vmatpush3.bf16.msra.mxu1 %v908_v7 }
  0x18   : > { %853 = vmatprep.subr.bf16.mxu1 %v930_v1 }
  0x19   : > { %834 = vmatpush3.bf16.msra.mxu0 %v900_v6 }
  0x1a   : > { %835 = vmatprep.subr.bf16.mxu0 %v930_v1 }
  0x1b   : > { %854 = vmatpush3.bf16.msra.mxu1 %v910_v9 }
  0x1c   : > { %855 = vmatprep.subr.bf16.mxu1 %v930_v1 }
  0x1d   : > { %836 = vmatpush3.bf16.msra.mxu0 %v901_v8 }
  0x1e   : > { %837 = vmatprep.subr.bf16.mxu0 %v930_v1 }
  0x1f   : > { %856 = vmatpush3.bf16.msra.mxu1 %v912_v11 }
  0x20   : > { %857 = vmatprep.subr.bf16.mxu1 %v930_v1 }
  0x21   : > { %838 = vmatpush3.bf16.msra.mxu0 %v902_v10 }
  0x22   : > { %839 = vmatprep.subr.bf16.mxu0 %v930_v1 }
  0x23   : > { %858 = vmatpush3.bf16.msra.mxu1 %v914_v13 }
  0x24   : > { %859 = vmatprep.subr.bf16.mxu1 %v930_v1 }
  0x25   : > { %840 = vmatpush3.bf16.msra.mxu0 %v903_v12 }
  0x26   : > { %841 = vmatprep.subr.bf16.mxu0 %v930_v1 }
  0x27   : > { %860 = vmatpush3.bf16.msra.mxu1 %v916_v16 }
  0x28   : > { %861 = vmatprep.subr.bf16.mxu1 %v930_v1 }
  0x29   : > { %842 = vmatpush3.bf16.msra.mxu0 %v905_v14 }
  0x2a   : > { %867 = vmatprep.subr.bf16.mxu0 %v930_v1 }
  0x2b   : > { %862 = vmatpush3.bf16.msra.mxu1 %v918_v18 }
  0x2c   : > { %844 = vmatmul.mubr.bf16.vlgmr.msra.gmra.mxu0 %v907_v15 }
  0x2d   : > { %868 = vmatpush3.bf16.msra.mxu0 %v909_v17  ;;  %883 = vmatprep.mubr.msk.bf16.mxu0 %vm931_vm0, %v930_v1 }
  0x2e   : > { %869 = vmatprep.subr.bf16.mxu0 %v930_v1  ;;  %864 = vmatmul.mubr.bf16.vlgmr.msra.gmra.mxu1 %v907_v15 }
  0x31   : > { %870 = vmatpush3.bf16.msra.mxu0 %v911_v19 }
  0x32   : > { %871 = vmatprep.subr.bf16.mxu0 %v930_v1 }
  0x35   : > { %872 = vmatpush3.bf16.msra.mxu0 %v913_v20 }
  0x36   : > { %873 = vmatprep.subr.bf16.mxu0 %v930_v1 }
  0x39   : > { %874 = vmatpush3.bf16.msra.mxu0 %v915_v21 }
  0x3a   : > { %875 = vmatprep.subr.bf16.mxu0 %v930_v1 }
  0x3d   : > { %876 = vmatpush3.bf16.msra.mxu0 %v917_v22 }
  0x3e   : > { %877 = vmatprep.subr.bf16.mxu0 %v930_v1 }
  0x41   : > { %878 = vmatpush3.bf16.msra.mxu0 %v919_v23 }
  0x42   : > { %879 = vmatprep.subr.bf16.mxu0 %v930_v1 }
  0x45   : > { %880 = vmatpush3.bf16.msra.mxu0 %v920_v24 }
  0x46   : > { %881 = vmatprep.subr.bf16.mxu0 %v930_v1 }
  0x49   : > { %882 = vmatpush3.bf16.msra.mxu0 %v921_v25 }
  0x4c   : > { %884 = vmatmul.mubr.bf16.vlgmr.msra.gmra.mxu0 %v907_v15 }
  0xec   : > { %v322_v26 = vpop.f32.mrf.mxu0 }
  0xed   : > { %v483_v38 = vrot.slane %v322_v26, 7 }
  0xee   : > { %v845_v27 = vpop.f32.mrf.mxu0  ;;  %v445_v30 = vpop.f32.mrf.mxu1 }
  0xef   : > { %v488_v41 = vrot.slane %v445_v30, 1 }
  0xf0   : > { %v325_v28 = vpop.f32.mrf.mxu0  ;;  %v865_v31 = vpop.f32.mrf.mxu1 }
  0xf1   : > { %v484_v36 = vrot.slane %v325_v28, 7 }
  0xf2   : > { %v846_v29 = vpop.f32.mrf.mxu0  ;;  %v448_v32 = vpop.f32.mrf.mxu1 }
  0xf3   : > { %v487_v40 = vsel %vm485_vm1, %v484_v36, %v483_v38  ;;  %v489_v42 = vrot.slane %v448_v32, 1  ;;  %v486_v50 = vsel %vm485_vm1, %v483_v38, %v484_v36 }
  0xf4   : > { %v866_v33 = vpop.f32.mrf.mxu1  ;;  %v493_v44 = vsel %vm479_vm2, %v487_v40, 0.0 }
  0xf5   : > { %v491_v47 = vsel %vm490_vm3, %v488_v41, %v489_v42  ;;  %v492_v49 = vsel %vm490_vm3, %v489_v42, %v488_v41 }
  0xf6   : > { %v585_v54 = vsel %vm482_vm4, %v492_v49, 0.0 }
 0x10c   : > { %v577_v45 = vpop.f32.mrf.mxu0 }
 0x10d   : > { %v578_v46 = vadd.f32 %v577_v45, %v493_v44 }
 0x10e   : > { %v885_v48 = vpop.f32.mrf.mxu0 }
 0x10f   : > { %v586_v52 = vadd.f32 %v578_v46, %v491_v47 }
 0x110   : > { %v580_v51 = vpop.f32.mrf.mxu0 }
 0x111   : > { %v581_v53 = vadd.f32 %v580_v51, %v486_v50  ;;  %v606_v57 = vmul.f32 %v586_v52, %v586_v52 }
 0x112   : > { %v886_v55 = vpop.f32.mrf.mxu0 }
 0x113   : > { %v587_v56 = vadd.f32 %v585_v54, %v581_v53 }
 0x115   : > { %v798_v58 = vpack.c.bf16 %v587_v56, %v586_v52  ;;  %v598_v59 = vadd.f32 %v587_v56, %v586_v52  ;;  %v607_v60 = vmul.f32 %v587_v56, %v587_v56 }
 0x117   : > { %799 = vst [vmem:[%s208_s25] sm:$0xff] %v798_v58   ;;  %v599_v61 = vrot.slane %v598_v59, 4  ;;  %v608_v62 = vadd.f32 %v607_v60, %v606_v57 }
 0x119   : > { %v600_v63 = vadd.f32 %v599_v61, %v598_v59  ;;  %v609_v0 = vrot.slane %v608_v62, 4 }
 0x11b   : > { %v601_v1 = vrot.slane %v600_v63, 2  ;;  %v610_v2 = vadd.f32 %v609_v0, %v608_v62 }
 0x11d   : > { %v602_v3 = vadd.f32 %v601_v1, %v600_v63  ;;  %v611_v4 = vrot.slane %v610_v2, 2 }
 0x11f   : > { %v603_v5 = vrot.slane %v602_v3, 1  ;;  %v612_v6 = vadd.f32 %v611_v4, %v610_v2 }
 0x121   : > { %v604_v7 = vadd.f32 %v603_v5, %v602_v3  ;;  %v613_v8 = vrot.slane %v612_v6, 1 }
 0x123   : > { %605 = vst [vmem:[%s211_s23] sm:$0x1] %v604_v7  ;;  %v614_v9 = vadd.f32 %v613_v8, %v612_v6 }
 0x125   : > { %615 = vst [vmem:[%s214_s5] sm:$0x1] %v614_v9 }
 0x126 PF: > { %s15_s15 = sadd.s32 1, %s928_s15  }
 0x127   : > { %p12_p4 = scmp.ge.s32.totalorder %s15_s15, 4  }
 0x129   :  { %14 = sbr.rel (!%p12_p4) target bundleno = 1 (0x1), region = 84 }

// kernel: basic_block_pallas.5
= control target key start
LH: loop header
LB: loop body
LE: loop exit
PB: predicated region body
PF: predicated region fallthrough
CT: control target
= control target key end

     0   :  { %s384_s15 = smov 0   ;;  %s410_s0 = inlined_call_operand.vmem [shape: bf16[2,16,128], index: 0, kind: input, shape index: {}]   ;;  %s411_s1 = inlined_call_operand.vmem [shape: bf16[2,16,128], index: 1, kind: input, shape index: {}]   ;;  %s412_s2 = inlined_call_operand.vmem [shape: f32[1,128], index: 2, kind: input, shape index: {}]   ;;  %s413_s3 = inlined_call_operand.vmem [shape: f32[1,128], index: 3, kind: input, shape index: {}]   ;;  %s414_s4 = inlined_call_operand.vmem [shape: f32[2,16,128], index: 4, kind: output, shape index: {}]  }
   0x1 LB: > { %s317_s16 = sadd.s32 4294967295, %s357_s15   ;;  %p321_p0 = scmp.ge.s32.totalorder %s357_s15, 1  ;;  %s357_s15 = sphi %s384_s15, %s14_s15  }
   0x2   : > { %p172_p1 = scmp.lt.s32.totalorder %s357_s15, 3 }
   0x4   : > { %p173_p2 = pnand %p321_p0, %p172_p1 }
   0x5   : > { %p203_p3 = scmp.lt.s32.totalorder (!%p173_p2), %s317_s16, 1 }
   0x6   : > { %176 = sbr.rel (%p173_p2) target bundleno = 26 (0x1a), region = 36 }
   0xb   : > { %s416_s16 = smov (!%p203_p3, %s317_s16), 1  ;;  %v328_v2 = vld [vmem:[%s412_s2] ss:$0 sm:$0xff] }
   0xc   : > { %s332_s17 = sshll.u32 %s416_s16, 3  ;;  %v329_v5 = vld [vmem:[%s413_s3] ss:$0 sm:$0xff]  ;;  %s334_s28 = sshll.u32 %s416_s16, 4 }
   0xd   : > { %s207_s20 = scalar_lea.vmem %s410_s0, %s332_s17  ;;  %s212_s23 = scalar_lea.vmem %s411_s1, %s332_s17 }
   0xe   : > { %v336_v0 = vld [vmem:[%s207_s20] sm:$0xff]   ;;  %s217_s5 = scalar_lea.vmem %s414_s4, %s334_s28 }
   0xf   : > { %v340_v1 = vld [vmem:[%s212_s23] sm:$0xff]   ;;  %v337_v3 = vunpack.c.l.bf16 %v336_v0  ;;  %v338_v4 = vunpack.c.h.bf16 %v336_v0 }
  0x10   : > { %v341_v6 = vunpack.c.l.bf16 %v340_v1  ;;  %v342_v8 = vunpack.c.h.bf16 %v340_v1 }
  0x11   : > { %v233_v7 = vmul.f32 %v337_v3, %v328_v2  ;;  %v234_v9 = vmul.f32 %v338_v4, %v328_v2 }
  0x13   : > { %v242_v10 = vadd.f32 %v329_v5, %v233_v7  ;;  %v243_v11 = vadd.f32 %v329_v5, %v234_v9 }
  0x15   : > { %v244_v12 = vadd.f32 %v341_v6, %v242_v10  ;;  %v245_v13 = vadd.f32 %v342_v8, %v243_v11 }
  0x17   : > { %v246_v14 = vmax.f32 %v244_v12, 0.0  ;;  %v247_v15 = vmax.f32 %v245_v13, 0.0 }
  0x19   : > { %248 = vst [vmem:[%s217_s5] sm:$0xff] %v246_v14  ;;  %249 = vst [vmem:[%s217_s5 + $0x8] sm:$0xff] %v247_v15 }
  0x1a PF: > { %s14_s15 = sadd.s32 1, %s357_s15  }
  0x1b   : > { %p11_p4 = scmp.ge.s32.totalorder %s14_s15, 4  }
  0x1d   :  { %13 = sbr.rel (!%p11_p4) target bundleno = 1 (0x1), region = 69 }

// kernel: basic_block_pallas.4
= control target key start
LH: loop header
LB: loop body
LE: loop exit
PB: predicated region body
PF: predicated region fallthrough
CT: control target
= control target key end

     0   :  { %s1042_s21 = smov 0   ;;  %s1184_s0 = inlined_call_operand.vmem [shape: bf16[2,16,128], index: 0, kind: input, shape index: {}]   ;;  %s1185_s1 = inlined_call_operand.vmem [shape: f32[1,128], index: 1, kind: input, shape index: {}]   ;;  %s1186_s2 = inlined_call_operand.vmem [shape: f32[1,128], index: 2, kind: input, shape index: {}]   ;;  %s1187_s3 = inlined_call_operand.vmem [shape: bf16[3,128,128], index: 3, kind: input, shape index: {}]   ;;  %s1188_s4 = inlined_call_operand.vmem [shape: bf16[2,16,128], index: 4, kind: output, shape index: {0}]   ;;  %s1189_s5 = inlined_call_operand.vmem [shape: f32[2,1,128], index: 5, kind: output, shape index: {1}]   ;;  %s1190_s6 = inlined_call_operand.vmem [shape: f32[2,1,128], index: 6, kind: output, shape index: {2}]  }
   0x1 LB: > { %s792_s22 = sadd.s32 4294967295, %s1003_s21   ;;  %p796_p0 = scmp.ge.s32.totalorder %s1003_s21, 1  ;;  %s1003_s21 = sphi %s1042_s21, %s17_s21  }
   0x2   : > { %p217_p1 = scmp.lt.s32.totalorder %s1003_s21, 3 }
   0x4   : > { %p218_p2 = pnand %p796_p0, %p217_p1 }
   0x5   : > { %p253_p3 = scmp.lt.s32.totalorder (!%p218_p2), %s792_s22, 1 }
   0x6   : > { %221 = sbr.rel (%p218_p2) target bundleno = 294 (0x126), region = 36 }
   0xb   : > { %v973_v0 = vld [vmem:[%s1187_s3 + $0x38] sm:$0xff]   ;;  %v1005_v1 = vmov 0.0   ;;  %v974_v2 = vld [vmem:[%s1187_s3 + $0x30] sm:$0xff]   ;;  %vm1006_vm0 = vmmov 0   ;;  %s1192_s22 = smov (!%p253_p3, %s792_s22), 1  ;;  %v975_v3 = vld [vmem:[%s1187_s3 + $0x28] sm:$0xff]   ;;  %v523_v45 = vlaneseq }
   0xc   : > { %903 = vmatprep.subr.bf16.mxu0 %v1005_v1  ;;  %923 = vmatprep.subr.bf16.mxu1 %v1005_v1  ;;  %s863_s29 = sshll.u32 %s1192_s22, 3  ;;  %v980_v4 = vld [vmem:[%s1187_s3 + $0xb8] sm:$0xff]   ;;  %v982_v5 = vld [vmem:[%s1187_s3 + $0xb0] sm:$0xff]   ;;  %v976_v6 = vld [vmem:[%s1187_s3 + $0x20] sm:$0xff]   ;;  %s268_s20 = scalar_lea.vmem %s1190_s6, %s1192_s22 }
   0xd   : > { %904 = vmatpush3.bf16.msra.mxu0 %v973_v0  ;;  %919 = vmatprep.mubr.msk.bf16.mxu0 %vm1006_vm0, %v1005_v1  ;;  %s257_s10 = scalar_lea.vmem %s1184_s0, %s863_s29  ;;  %v977_v8 = vld [vmem:[%s1187_s3 + $0x18] sm:$0xff]   ;;  %v983_v11 = vld [vmem:[%s1187_s3 + $0xa8] sm:$0xff]   ;;  %v801_v12 = vld [vmem:[%s1185_s1] ss:$0 sm:$0xff]  ;;  %v524_v46 = vshrl.u32 %v523_v45, 7  ;;  %s262_s15 = scalar_lea.vmem %s1188_s4, %s863_s29 }
   0xe   : > { %905 = vmatprep.subr.bf16.mxu0 %v1005_v1  ;;  %939 = vmatprep.mubr.msk.bf16.mxu1 %vm1006_vm0, %v1005_v1  ;;  %v868_v7 = vld [vmem:[%s257_s10] sm:$0xff]   ;;  %v978_v13 = vld [vmem:[%s1187_s3 + $0x10] sm:$0xff]   ;;  %v987_v20 = vld [vmem:[%s1187_s3 + $0x98] sm:$0xff]   ;;  %s265_s29 = scalar_lea.vmem %s1189_s5, %s1192_s22 }
   0xf   : > { %924 = vmatpush3.bf16.msra.mxu1 %v980_v4  ;;  %v869_v9 = vunpack.c.l.bf16 %v868_v7  ;;  %v870_v10 = vunpack.c.h.bf16 %v868_v7  ;;  %v985_v16 = vld [vmem:[%s1187_s3 + $0xa0] sm:$0xff]   ;;  %v979_v21 = vld [vmem:[%s1187_s3 + $0x8] sm:$0xff]   ;;  %v989_v24 = vld [vmem:[%s1187_s3 + $0x90] sm:$0xff]   ;;  %v530_v48 = vand.u32 15, %v524_v46  ;;  %vm556_vm1 = vcmp.lt.s32.totalorder %v524_v46, 1 }
  0x10   : > { %925 = vmatprep.subr.bf16.mxu1 %v1005_v1  ;;  %v802_v17 = vld [vmem:[%s1186_s2] ss:$0 sm:$0xff]  ;;  %v991_v27 = vld [vmem:[%s1187_s3 + $0x88] sm:$0xff]   ;;  %v984_v28 = vld [vmem:[%s1187_s3 + $0x78] sm:$0xff]   ;;  %v525_v50 = vadd.s32 8, %v524_v46  ;;  %vm561_vm3 = vcmp.lt.s32.totalorder %v524_v46, 7 }
  0x11   : > { %906 = vmatpush3.bf16.msra.mxu0 %v974_v2  ;;  %v281_v14 = vmul.f32 %v869_v9, %v801_v12  ;;  %v282_v15 = vmul.f32 %v870_v10, %v801_v12  ;;  %v981_v25 = vld [vmem:[%s1187_s3] sm:$0xff]   ;;  %v986_v30 = vld [vmem:[%s1187_s3 + $0x70] sm:$0xff]   ;;  %v988_v31 = vld [vmem:[%s1187_s3 + $0x68] sm:$0xff]   ;;  %vm550_vm2 = vcmp.ne.s32.totalorder %v530_v48, 0 }
  0x12   : > { %907 = vmatprep.subr.bf16.mxu0 %v1005_v1  ;;  %v993_v29 = vld [vmem:[%s1187_s3 + $0x80] sm:$0xff]   ;;  %v992_v33 = vld [vmem:[%s1187_s3 + $0x58] sm:$0xff]   ;;  %v994_v34 = vld [vmem:[%s1187_s3 + $0x50] sm:$0xff]   ;;  %v537_v54 = vand.u32 15, %v525_v50 }
  0x13   : > { %926 = vmatpush3.bf16.msra.mxu1 %v982_v5  ;;  %v290_v18 = vadd.f32 %v802_v17, %v281_v14  ;;  %v291_v19 = vadd.f32 %v802_v17, %v282_v15  ;;  %v990_v32 = vld [vmem:[%s1187_s3 + $0x60] sm:$0xff]   ;;  %v995_v35 = vld [vmem:[%s1187_s3 + $0x48] sm:$0xff]  }
  0x14   : > { %927 = vmatprep.subr.bf16.mxu1 %v1005_v1  ;;  %v996_v36 = vld [vmem:[%s1187_s3 + $0x40] sm:$0xff]   ;;  %vm553_vm4 = vcmp.ne.s32.totalorder %v537_v54, 15 }
  0x15   : > { %908 = vmatpush3.bf16.msra.mxu0 %v975_v3  ;;  %v292_v22 = vmax.f32 %v290_v18, 0.0  ;;  %v293_v23 = vmax.f32 %v291_v19, 0.0 }
  0x16   : > { %909 = vmatprep.subr.bf16.mxu0 %v1005_v1 }
  0x17   : > { %928 = vmatpush3.bf16.msra.mxu1 %v983_v11  ;;  %v294_v26 = vpack.c.bf16 %v293_v23, %v292_v22 }
  0x18   : > { %929 = vmatprep.subr.bf16.mxu1 %v1005_v1 }
  0x19   : > { %910 = vmatpush3.bf16.msra.mxu0 %v976_v6 }
  0x1a   : > { %911 = vmatprep.subr.bf16.mxu0 %v1005_v1 }
  0x1b   : > { %930 = vmatpush3.bf16.msra.mxu1 %v985_v16 }
  0x1c   : > { %931 = vmatprep.subr.bf16.mxu1 %v1005_v1 }
  0x1d   : > { %912 = vmatpush3.bf16.msra.mxu0 %v977_v8 }
  0x1e   : > { %913 = vmatprep.subr.bf16.mxu0 %v1005_v1 }
  0x1f   : > { %932 = vmatpush3.bf16.msra.mxu1 %v987_v20 }
  0x20   : > { %933 = vmatprep.subr.bf16.mxu1 %v1005_v1 }
  0x21   : > { %914 = vmatpush3.bf16.msra.mxu0 %v978_v13 }
  0x22   : > { %915 = vmatprep.subr.bf16.mxu0 %v1005_v1 }
  0x23   : > { %934 = vmatpush3.bf16.msra.mxu1 %v989_v24 }
  0x24   : > { %935 = vmatprep.subr.bf16.mxu1 %v1005_v1 }
  0x25   : > { %916 = vmatpush3.bf16.msra.mxu0 %v979_v21 }
  0x26   : > { %917 = vmatprep.subr.bf16.mxu0 %v1005_v1 }
  0x27   : > { %936 = vmatpush3.bf16.msra.mxu1 %v991_v27 }
  0x28   : > { %937 = vmatprep.subr.bf16.mxu1 %v1005_v1 }
  0x29   : > { %918 = vmatpush3.bf16.msra.mxu0 %v981_v25 }
  0x2a   : > { %943 = vmatprep.subr.bf16.mxu0 %v1005_v1 }
  0x2b   : > { %938 = vmatpush3.bf16.msra.mxu1 %v993_v29 }
  0x2c   : > { %920 = vmatmul.mubr.bf16.vlgmr.msra.gmra.mxu0 %v294_v26 }
  0x2d   : > { %944 = vmatpush3.bf16.msra.mxu0 %v984_v28  ;;  %959 = vmatprep.mubr.msk.bf16.mxu0 %vm1006_vm0, %v1005_v1 }
  0x2e   : > { %945 = vmatprep.subr.bf16.mxu0 %v1005_v1  ;;  %940 = vmatmul.mubr.bf16.vlgmr.msra.gmra.mxu1 %v294_v26 }
  0x31   : > { %946 = vmatpush3.bf16.msra.mxu0 %v986_v30 }
  0x32   : > { %947 = vmatprep.subr.bf16.mxu0 %v1005_v1 }
  0x35   : > { %948 = vmatpush3.bf16.msra.mxu0 %v988_v31 }
  0x36   : > { %949 = vmatprep.subr.bf16.mxu0 %v1005_v1 }
  0x39   : > { %950 = vmatpush3.bf16.msra.mxu0 %v990_v32 }
  0x3a   : > { %951 = vmatprep.subr.bf16.mxu0 %v1005_v1 }
  0x3d   : > { %952 = vmatpush3.bf16.msra.mxu0 %v992_v33 }
  0x3e   : > { %953 = vmatprep.subr.bf16.mxu0 %v1005_v1 }
  0x41   : > { %954 = vmatpush3.bf16.msra.mxu0 %v994_v34 }
  0x42   : > { %955 = vmatprep.subr.bf16.mxu0 %v1005_v1 }
  0x45   : > { %956 = vmatpush3.bf16.msra.mxu0 %v995_v35 }
  0x46   : > { %957 = vmatprep.subr.bf16.mxu0 %v1005_v1 }
  0x49   : > { %958 = vmatpush3.bf16.msra.mxu0 %v996_v36 }
  0x4c   : > { %960 = vmatmul.mubr.bf16.vlgmr.msra.gmra.mxu0 %v294_v26 }
  0xec   : > { %v393_v37 = vpop.f32.mrf.mxu0 }
  0xed   : > { %v554_v49 = vrot.slane %v393_v37, 7 }
  0xee   : > { %v921_v38 = vpop.f32.mrf.mxu0  ;;  %v516_v41 = vpop.f32.mrf.mxu1 }
  0xef   : > { %v559_v52 = vrot.slane %v516_v41, 1 }
  0xf0   : > { %v396_v39 = vpop.f32.mrf.mxu0  ;;  %v941_v42 = vpop.f32.mrf.mxu1 }
  0xf1   : > { %v555_v47 = vrot.slane %v396_v39, 7 }
  0xf2   : > { %v922_v40 = vpop.f32.mrf.mxu0  ;;  %v519_v43 = vpop.f32.mrf.mxu1 }
  0xf3   : > { %v558_v51 = vsel %vm556_vm1, %v555_v47, %v554_v49  ;;  %v560_v53 = vrot.slane %v519_v43, 1  ;;  %v557_v61 = vsel %vm556_vm1, %v554_v49, %v555_v47 }
  0xf4   : > { %v942_v44 = vpop.f32.mrf.mxu1  ;;  %v564_v55 = vsel %vm550_vm2, %v558_v51, 0.0 }
  0xf5   : > { %v562_v58 = vsel %vm561_vm3, %v559_v52, %v560_v53  ;;  %v563_v60 = vsel %vm561_vm3, %v560_v53, %v559_v52 }
  0xf6   : > { %v656_v1 = vsel %vm553_vm4, %v563_v60, 0.0 }
 0x10c   : > { %v648_v56 = vpop.f32.mrf.mxu0 }
 0x10d   : > { %v649_v57 = vadd.f32 %v648_v56, %v564_v55 }
 0x10e   : > { %v961_v59 = vpop.f32.mrf.mxu0 }
 0x10f   : > { %v657_v63 = vadd.f32 %v649_v57, %v562_v58 }
 0x110   : > { %v651_v62 = vpop.f32.mrf.mxu0 }
 0x111   : > { %v652_v0 = vadd.f32 %v651_v62, %v557_v61  ;;  %v677_v4 = vmul.f32 %v657_v63, %v657_v63 }
 0x112   : > { %v962_v2 = vpop.f32.mrf.mxu0 }
 0x113   : > { %v658_v3 = vadd.f32 %v656_v1, %v652_v0 }
 0x115   : > { %v874_v5 = vpack.c.bf16 %v658_v3, %v657_v63  ;;  %v669_v6 = vadd.f32 %v658_v3, %v657_v63  ;;  %v678_v7 = vmul.f32 %v658_v3, %v658_v3 }
 0x117   : > { %875 = vst [vmem:[%s262_s15] sm:$0xff] %v874_v5   ;;  %v670_v8 = vrot.slane %v669_v6, 4  ;;  %v679_v9 = vadd.f32 %v678_v7, %v677_v4 }
 0x119   : > { %v671_v10 = vadd.f32 %v670_v8, %v669_v6  ;;  %v680_v11 = vrot.slane %v679_v9, 4 }
 0x11b   : > { %v672_v12 = vrot.slane %v671_v10, 2  ;;  %v681_v13 = vadd.f32 %v680_v11, %v679_v9 }
 0x11d   : > { %v673_v14 = vadd.f32 %v672_v12, %v671_v10  ;;  %v682_v15 = vrot.slane %v681_v13, 2 }
 0x11f   : > { %v674_v16 = vrot.slane %v673_v14, 1  ;;  %v683_v17 = vadd.f32 %v682_v15, %v681_v13 }
 0x121   : > { %v675_v18 = vadd.f32 %v674_v16, %v673_v14  ;;  %v684_v19 = vrot.slane %v683_v17, 1 }
 0x123   : > { %676 = vst [vmem:[%s265_s29] sm:$0x1] %v675_v18  ;;  %v685_v20 = vadd.f32 %v684_v19, %v683_v17 }
 0x125   : > { %686 = vst [vmem:[%s268_s20] sm:$0x1] %v685_v20 }
 0x126 PF: > { %s17_s21 = sadd.s32 1, %s1003_s21  }
 0x127   : > { %p14_p4 = scmp.ge.s32.totalorder %s17_s21, 4  }
 0x129   :  { %16 = sbr.rel (!%p14_p4) target bundleno = 1 (0x1), region = 92 }

</bundles_post_ra>
